<compile_context>
chip_gen: v7x
topology: tpu7x:2x2x1
jax: 0.10.0
libtpu: 0.0.40
codegen_flags: <defaults>
</compile_context>

<pallas_src>
import functools
import math

import jax
import jax.numpy as jnp
from jax import lax
from jax.experimental import pallas as pl
from jax.experimental.pallas import tpu as pltpu


# ~1M elements of x per block (4 MiB f32 / 2 MiB bf16).
_TARGET_BLOCK_ELEMS = 1 << 20
# in(2x) + out(2x) pipeline buffers + f32 temporaries fit comfortably; safe on
# v5e/v6e (128 MiB physical) and v7x (64 MiB physical).
_VMEM_LIMIT_BYTES = 48 * 1024 * 1024


def _round_up(v, m):
    return ((v + m - 1) // m) * m


def _sublane_pack(dtype):
    # rows per packed sublane group: 8 (4-byte), 16 (2-byte), 32 (1-byte).
    return {4: 8, 2: 16, 1: 32}.get(jnp.dtype(dtype).itemsize, 8)


def _pick_seq_tile(S, elems_per_pos, align):
    """Sequence tile: multiple of the sublane pack, ~_TARGET_BLOCK_ELEMS per
    block, and >= 2 grid steps whenever S allows it (v7x megacore).  Never
    degenerates to a whole-array block: the grid uses pl.cdiv and Pallas masks
    the edge block, so no divisor of S is required."""
    max_ts = max(align,
                 (_TARGET_BLOCK_ELEMS // max(1, elems_per_pos)) // align * align)
    if max_ts >= S:
        if S >= 2 * align:
            return _round_up((S + 1) // 2, align)   # exactly 2 parallel steps
        return S                                    # tiny input: single block
    return max_ts                                   # cdiv(S, max_ts) >= 2


def _pos_enc_kernel(inv_freq_ref, phase_ref, x_ref, o_ref, *, t_s, batch):
    """One (t_s, batch*d_model) tile of x viewed as (S, B*D).

    pos comes straight from the S-only grid axis (no integer division);
    cos is folded into sin via a +pi/2 phase (one transcendental per value);
    the (t_s, D) sinusoid is replicated across batch lanes with a lane-concat.
    """
    pos = (pl.program_id(0) * t_s
           + lax.broadcasted_iota(jnp.int32, (t_s, 1), 0)).astype(jnp.float32)
    pe_d = jnp.sin(pos * inv_freq_ref[...] + phase_ref[...])       # (t_s, D) f32
    pe = pe_d if batch == 1 else jnp.tile(pe_d, (1, batch))        # (t_s, B*D)
    # Add in f32 (matches the torch f32 pe buffer); single cast on the store.
    o_ref[...] = (x_ref[...].astype(jnp.float32) + pe).astype(o_ref.dtype)
    # TODO(synk): nn.Dropout(p) treated as eval-mode identity; a train-mode
    # path would need pltpu.prng_* masking and 1/(1-p) scaling.


def positional_encoding_forward(x, *, dropout_p=0.1, max_len=5000,
                                donate_input=False):
    """PositionalEncoding.forward (eval mode). x: (seq_len, batch, d_model)."""
    S, B, D = x.shape
    assert S <= max_len, "seq_len exceeds max_len"
    align = _sublane_pack(x.dtype)

    # Flatten batch into the lane axis: lane-dense stores for any D, and the
    # row index equals the sequence position (no int division in the kernel).
    xf = x.reshape(S, B * D)                  # free reshape (row-major contiguous)
    t_s = _pick_seq_tile(S, B * D, align)
    grid = (pl.cdiv(S, t_s),)                 # edge block masked by Pallas

    # Per-feature angular frequency / parity phase, computed once per call.
    # Their index_map is constant, so the (1, D) blocks stay resident in VMEM.
    k = jnp.arange(D)
    inv_freq = jnp.exp(((k // 2) * 2).astype(jnp.float32)
                       * (-math.log(10000.0) / D)).reshape(1, D)
    phase = ((k % 2).astype(jnp.float32) * (math.pi / 2.0)).reshape(1, D)

    x_spec = pl.BlockSpec((t_s, B * D), lambda i: (i, 0))
    const_spec = pl.BlockSpec((1, D), lambda i: (0, 0))

    kwargs = {}
    if donate_input:                          # only if the caller drops x
        kwargs["input_output_aliases"] = {2: 0}

    out = pl.pallas_call(
        functools.partial(_pos_enc_kernel, t_s=t_s, batch=B),
        out_shape=jax.ShapeDtypeStruct((S, B * D), x.dtype),
        grid=grid,
        in_specs=[const_spec, const_spec, x_spec],
        out_specs=x_spec,
        compiler_params=pltpu.CompilerParams(
            dimension_semantics=("parallel",),
            vmem_limit_bytes=_VMEM_LIMIT_BYTES),
        **kwargs,
    )(inv_freq, phase, xf)
    return out.reshape(S, B, D)


# ----------------------------------------------------------------------------
# Pure-JAX reference (mirrors the torch buffer construction) for verification.
# ----------------------------------------------------------------------------
def _positional_encoding_ref(x, max_len=5000):
    S, B, D = x.shape
    position = jnp.arange(max_len, dtype=jnp.float32)[:, None]
    div_term = jnp.exp(jnp.arange(0, D, 2, dtype=jnp.float32)
                       * (-math.log(10000.0) / D))
    pe = jnp.zeros((max_len, 1, D), jnp.float32)
    pe = pe.at[:, 0, 0::2].set(jnp.sin(position * div_term))
    pe = pe.at[:, 0, 1::2].set(jnp.cos(position * div_term))
    return x + pe[:S]


if __name__ == "__main__":
    # Primary check: small f32 case, x: [seq_len, batch, embedding_dim].
    SEQ, BATCH, D_MODEL = 8, 2, 32
    key = jax.random.PRNGKey(0)
    x = jax.random.normal(key, (SEQ, BATCH, D_MODEL), jnp.float32)

    out = jax.block_until_ready(positional_encoding_forward(x))
    ref = _positional_encoding_ref(x)
    assert out.shape == (SEQ, BATCH, D_MODEL), out.shape
    assert bool(jnp.all(jnp.isfinite(out)))
    assert bool(jnp.allclose(out, ref, atol=1e-3, rtol=1e-3)), \
        float(jnp.max(jnp.abs(out - ref)))

    # Secondary check: bf16 input, non-divisible S -> 2 parallel grid steps
    # with a masked edge block, batch replication via lane-concat.
    x2 = jax.random.normal(jax.random.PRNGKey(1), (40, 4, 64), jnp.bfloat16)
    out2 = jax.block_until_ready(positional_encoding_forward(x2))
    ref2 = _positional_encoding_ref(x2.astype(jnp.float32)).astype(jnp.bfloat16)
    assert out2.shape == x2.shape
    assert bool(jnp.allclose(out2.astype(jnp.float32), ref2.astype(jnp.float32),
                             atol=3e-2, rtol=3e-2))

    print("KERNEL_OK")
</pallas_src>

<mosaic_0001>
module attributes {stable_mosaic.version = 11 : i64} {
  func.func @_pos_enc_kernel(%arg0: i32, %arg1: memref<1x32xf32, #tpu.memory_space<vmem>>, %arg2: memref<1x32xf32, #tpu.memory_space<vmem>>, %arg3: memref<8x64xf32, #tpu.memory_space<vmem>>, %arg4: memref<8x64xf32, #tpu.memory_space<vmem>>) attributes {dimension_semantics = [#tpu.dimension_semantics<parallel>], iteration_bounds = array<i64: 1>, scalar_prefetch = 0 : i64, scratch_operands = 0 : i64, tpu.core_type = #tpu.core_type<tc>, window_params = [{pipeline_mode = #tpu.pipeline_mode<synchronous>, transform_indices = @transform_0, window_bounds = array<i64: 1, 32>}, {pipeline_mode = #tpu.pipeline_mode<synchronous>, transform_indices = @transform_1, window_bounds = array<i64: 1, 32>}, {transform_indices = @transform_2, window_bounds = array<i64: 8, 64>}, {transform_indices = @transform_3, window_bounds = array<i64: 8, 64>}]} {
    %c8_i32 = arith.constant 8 : i32
    %0 = arith.muli %arg0, %c8_i32 : i32
    %1 = tpu.iota {dimensions = array<i32: 0>} : vector<8x1xi32>
    %2 = vector.broadcast %0 : i32 to vector<8x1xi32>
    %3 = arith.addi %2, %1 : vector<8x1xi32>
    %4 = arith.sitofp %3 : vector<8x1xi32> to vector<8x1xf32>
    %c0 = arith.constant 0 : index
    %c0_0 = arith.constant 0 : index
    %5 = vector.load %arg1[%c0, %c0_0] : memref<1x32xf32, #tpu.memory_space<vmem>>, vector<1x32xf32>
    %6 = vector.broadcast %4 : vector<8x1xf32> to vector<8x32xf32>
    %7 = vector.broadcast %5 : vector<1x32xf32> to vector<8x32xf32>
    %8 = arith.mulf %6, %7 : vector<8x32xf32>
    %c0_1 = arith.constant 0 : index
    %c0_2 = arith.constant 0 : index
    %9 = vector.load %arg2[%c0_1, %c0_2] : memref<1x32xf32, #tpu.memory_space<vmem>>, vector<1x32xf32>
    %10 = vector.broadcast %9 : vector<1x32xf32> to vector<8x32xf32>
    %11 = arith.addf %8, %10 : vector<8x32xf32>
    %12 = math.sin %11 : vector<8x32xf32>
    %13 = tpu.concatenate %12, %12 in 1 : vector<8x32xf32>, vector<8x32xf32> -> vector<8x64xf32>
    %c0_3 = arith.constant 0 : index
    %c0_4 = arith.constant 0 : index
    %14 = vector.load %arg3[%c0_3, %c0_4] : memref<8x64xf32, #tpu.memory_space<vmem>>, vector<8x64xf32>
    %15 = arith.addf %14, %13 : vector<8x64xf32>
    %c0_5 = arith.constant 0 : index
    %c0_6 = arith.constant 0 : index
    %16 = vector.load %arg4[%c0_5, %c0_6] : memref<8x64xf32, #tpu.memory_space<vmem>>, vector<8x64xf32>
    tpu.vector_store %arg4[%c0_5, %c0_6], %15 {strides = array<i32>} : memref<8x64xf32, #tpu.memory_space<vmem>>, vector<8x64xf32>,
    return
  }
  func.func @transform_0(%arg0: i32) -> (i32, i32) {
    %c0_i32 = arith.constant 0 : i32
    %c0_i32_0 = arith.constant 0 : i32
    %c0_i32_1 = arith.constant 0 : i32
    return %c0_i32, %c0_i32_0 : i32, i32
  }
  func.func @transform_1(%arg0: i32) -> (i32, i32) {
    %c0_i32 = arith.constant 0 : i32
    %c0_i32_0 = arith.constant 0 : i32
    %c0_i32_1 = arith.constant 0 : i32
    return %c0_i32, %c0_i32_0 : i32, i32
  }
  func.func @transform_2(%arg0: i32) -> (i32, i32) {
    %c0_i32 = arith.constant 0 : i32
    %c0_i32_0 = arith.constant 0 : i32
    return %arg0, %c0_i32 : i32, i32
  }
  func.func @transform_3(%arg0: i32) -> (i32, i32) {
    %c0_i32 = arith.constant 0 : i32
    %c0_i32_0 = arith.constant 0 : i32
    return %arg0, %c0_i32 : i32, i32
  }
}

</mosaic_0001>

<bundles_post_ra>
// kernel: tpu_custom_call.1
= control target key start
LH: loop header
LB: loop body
LE: loop exit
PB: predicated region body
PF: predicated region fallthrough
CT: control target
= control target key end

     0   :  { %8 = vsyncpa [#allocation3], 0  ;;  %s377_s0 = inlined_call_operand.hbm [shape: f32[1,32], index: 0, kind: input, shape index: {}]   ;;  %s378_s1 = inlined_call_operand.vmem [shape: f32[1,32], index: 1, kind: input, shape index: {}]   ;;  %s379_s2 = inlined_call_operand.hbm [shape: f32[8,64], index: 2, kind: input, shape index: {}]   ;;  %s380_s3 = inlined_call_operand.hbm [shape: f32[8,64], index: 3, kind: output, shape index: {}]  }
   0x1   :  { %9 = vsyncpa [#allocation6], 0 }
   0x2   :  { %10 = vsyncpa [#allocation4], 0  ;;  %s287_s12 = smov [#allocation2]   ;;  %s288_s14 = smov [#allocation5]  }
   0x3   :  { %s17_s13 = sshll.u32 %s287_s12, 4  ;;  %s29_s15 = sshll.u32 %s288_s14, 4  ;;  %s18_s13 = int_to_ptr.vmem [resolvable:$true] %s17_s13  ;;  %s30_s15 = int_to_ptr.vmem [resolvable:$true] %s29_s15 }
   0x4   :  { %s215_s18 = scalar_lea.hbm %s377_s0, 16 }
   0x5   :  { %p216_p0 = scmp.ne.s32.totalorder %s377_s0, %s215_s18  ;;  %p219_p1 = scmp.lt.u32.totalorder %s215_s18, %s377_s0 }
   0x7   :  { %p221_p2 = pnand %p219_p1, %p216_p0 }
   0x9   :  { %224 = shalt.err (!%p221_p2)
}
   0xa   :  { %s225_s23 = scalar_lea.vmem %s18_s13, 16  ;;  %s229_s24 = scalar_lea.vmem %s18_s13, 32 }
   0xb   :  { %p226_p3 = scmp.ne.s32.totalorder %s18_s13, %s225_s23  ;;  %p230_p4 = scmp.lt.s32.totalorder %s18_s13, %s18_s13 }
   0xc   :  { %p231_p5 = scmp.lt.s32.totalorder %s229_s24, %s225_s23 }
   0xe   :  { %p232_p6 = por %p231_p5, %p230_p4 }
  0x10   :  { %p233_p7 = pnand %p232_p6, %p226_p3 }
  0x12   :  { %236 = shalt.err (!%p233_p7)
}
  0x13   :  { %20 = dma.hbm_to_vmem [thread:$0]  %s377_s0, 16, %s18_s13, [#allocation3]  }
  0x14   :  { %s237_s29 = scalar_lea.hbm %s379_s2, 128 }
  0x15   :  { %p238_p8 = scmp.ne.s32.totalorder %s379_s2, %s237_s29  ;;  %p241_p9 = scmp.lt.u32.totalorder %s237_s29, %s379_s2 }
  0x17   :  { %p243_p10 = pnand %p241_p9, %p238_p8 }
  0x19   :  { %246 = shalt.err (!%p243_p10)
}
  0x1a   :  { %s247_s7 = scalar_lea.vmem %s30_s15, 128  ;;  %p252_p12 = scmp.lt.s32.totalorder %s30_s15, %s30_s15 }
  0x1b   :  { %p248_p11 = scmp.ne.s32.totalorder %s30_s15, %s247_s7  ;;  %p253_p13 = scmp.lt.s32.totalorder %s247_s7, %s247_s7 }
  0x1d   :  { %p254_p0 = por %p253_p13, %p252_p12 }
  0x1f   :  { %p255_p1 = pnand %p254_p0, %p248_p11 }
  0x21   :  { %258 = shalt.err (!%p255_p1)
}
  0x22   :  { %32 = dma.hbm_to_vmem [thread:$0]  %s379_s2, 128, %s30_s15, [#allocation6]  }
  0x23   :  { %281 = dma.done.wait [#allocation3], 16  }
  0x24   :  { %282 = vsyncadd [#allocation3], 4294967280 }
  0x25   :  { %283 = dma.done.wait [#allocation6], 128  }
  0x26   :  { %284 = vsyncadd [#allocation6], 4294967168  ;;  %v40_v0 = vlaneseq  ;;  %v191_v3 = vld [vmem:[#allocation2] ss:$0 sm:$0xff]  ;;  %v289_v18 = vmov 683565275  }
  0x27   :  { %v192_v4 = vld [vmem:[%s378_s1] ss:$0 sm:$0xff]  ;;  %v290_v20 = vmov 2475754826   ;;  %v291_v22 = vmov 2131351028  }
  0x28   :  { %v41_v1 = vshrl.u32 %v40_v0, 7  ;;  %v292_v24 = vmov 2102212464   ;;  %v293_v26 = vmov 920167782   ;;  %s295_s1 = smov 32  }
  0x29   :  { %v294_v33 = vmov 1326507024   ;;  %vm169_vm13 = vcmask 261120   ;;  %s296_s2 = smov [#allocation7]   ;;  %vm173_vm14 = vcmask 523264  }
  0x2a   :  { %v44_v2 = vcvt.s32.f32 %v41_v1  ;;  %s181_s11 = sshll.u32 %s296_s2, 4  ;;  %s182_s11 = int_to_ptr.vmem [resolvable:$true] %s181_s11 }
  0x2b   :  { %s259_s12 = scalar_lea.vmem %s182_s11, 128  ;;  %p264_p3 = scmp.lt.s32.totalorder %s182_s11, %s182_s11 }
  0x2c   :  { %v52_v5 = vmul.f32 %v191_v3, %v44_v2  ;;  %p260_p2 = scmp.ne.s32.totalorder %s182_s11, %s259_s12  ;;  %p265_p4 = scmp.lt.s32.totalorder %s259_s12, %s259_s12 }
  0x2e   :  { %v344_v6 = vadd.f32 %v192_v4, %v52_v5  ;;  %p266_p5 = por %p265_p4, %p264_p3 }
  0x30   :  { %v64_v7 = vand.u32 2139095040, %v344_v6  ;;  %v61_v9 = vand.u32 2147483647, %v344_v6  ;;  %vm63_vm7 = vcmp.lt.s32.totalorder %v344_v6, 0  ;;  %vm153_vm12 = vweird.f32 %v344_v6  ;;  %p267_p6 = pnand %p266_p5, %p260_p2 }
  0x32   :  { %v65_v8 = vshrl.u32 %v64_v7, 23  ;;  %v68_v12 = vand.u32 8388607, %v61_v9  ;;  %vm62_vm8 = vcmp.le.f32.partialorder %v61_v9, 0.7853982 }
  0x34   :  { %v193_v10 = vadd.s32 4294967169, %v65_v8  ;;  %v69_v15 = vor.u32 8388608, %v68_v12 }
  0x36   :  { %v71_v11 = vadd.s32 1, %v193_v10  ;;  %v109_v35 = vshll.u32 %v69_v15, 8 }
  0x38   :  { %vm72_vm0 = vcmp.gt.s32.totalorder %v71_v11, 0 }
  0x39   :  { %v73_v13 = vsel %vm72_vm0, %v71_v11, 0 }
  0x3a   :  { %v75_v14 = vand.u32 31, %v73_v13  ;;  %v74_v16 = vshrl.u32 %v73_v13, 5 }
  0x3c   :  { %v76_v17 = vsub.s32 32, %v75_v14  ;;  %v78_v19 = vshll.u32 %v289_v18, %v75_v14  ;;  %v81_v21 = vshll.u32 %v290_v20, %v75_v14  ;;  %v84_v23 = vshll.u32 %v291_v22, %v75_v14 }
  0x3d   :  { %v87_v25 = vshll.u32 %v292_v24, %v75_v14  ;;  %v90_v27 = vshll.u32 %v293_v26, %v75_v14  ;;  %vm93_vm1 = vcmp.lt.s32.totalorder %v74_v16, 1  ;;  %vm96_vm2 = vcmp.lt.s32.totalorder %v74_v16, 4 }
  0x3e   :  { %v77_v28 = vshrl.u32 %v289_v18, %v76_v17  ;;  %v79_v29 = vshrl.u32 %v290_v20, %v76_v17  ;;  %v82_v30 = vshrl.u32 %v291_v22, %v76_v17  ;;  %v85_v31 = vshrl.u32 %v292_v24, %v76_v17 }
  0x3f   :  { %v88_v32 = vshrl.u32 %v293_v26, %v76_v17  ;;  %v91_v34 = vshrl.u32 %v294_v33, %v76_v17  ;;  %vm94_vm3 = vcmp.lt.s32.totalorder %v74_v16, 2  ;;  %vm95_vm4 = vcmp.lt.s32.totalorder %v74_v16, 3 }
  0x40   :  { %v80_v36 = vor.u32 %v79_v29, %v78_v19  ;;  %v83_v37 = vor.u32 %v82_v30, %v81_v21  ;;  %v86_v38 = vor.u32 %v85_v31, %v84_v23 }
  0x41   :  { %v89_v39 = vor.u32 %v88_v32, %v87_v25  ;;  %v92_v40 = vor.u32 %v91_v34, %v90_v27 }
  0x42   :  { %v97_v41 = vsel %vm93_vm1, %v77_v28, %v80_v36  ;;  %v98_v42 = vsel %vm96_vm2, %v86_v38, 2102212464  ;;  %v101_v43 = vsel %vm93_vm1, %v80_v36, %v83_v37  ;;  %v105_v44 = vsel %vm93_vm1, %v83_v37, %v86_v38 }
  0x43   :  { %v99_v45 = vsel %vm95_vm4, %v83_v37, %v98_v42  ;;  %v102_v46 = vsel %vm96_vm2, %v89_v39, 920167782  ;;  %v106_v47 = vsel %vm96_vm2, %v92_v40, 1326507024 }
  0x44   :  { %v103_v48 = vsel %vm95_vm4, %v86_v38, %v102_v46  ;;  %v107_v49 = vsel %vm95_vm4, %v89_v39, %v106_v47  ;;  %v100_v50 = vsel %vm94_vm3, %v97_v41, %v99_v45 }
  0x45   :  { %v104_v51 = vsel %vm94_vm3, %v101_v43, %v103_v48  ;;  %v108_v52 = vsel %vm94_vm3, %v105_v44, %v107_v49  ;;  %v116_v57 = vmul.u32 %v109_v35, %v100_v50 }
  0x46   :  { %v350_v53 = vmul.u32.u64.low %v109_v35, %v108_v52  ;;  %v351_v54 = vmul.u32.u64.high %v109_v35, %v108_v52, %v350_v53  ;;  %v353_v55 = vmul.u32.u64.low %v109_v35, %v104_v51  ;;  %v354_v56 = vmul.u32.u64.high %v109_v35, %v104_v51, %v353_v55  ;;  %v171_v35 = vld [vmem:[#allocation5] sm:$0xff] }
  0x48   :  { %vm118_vm5 = vc.u32 %v351_v54, %v353_v55  ;;  %v119_v58 = vadd.s32 1, %v354_v56  ;;  %v117_v5 = vadd.s32 %v353_v55, %v351_v54 }
  0x4a   :  { %v120_v59 = vsel %vm118_vm5, %v119_v58, %v354_v56 }
  0x4b   :  { %v121_v60 = vadd.s32 %v120_v59, %v116_v57 }
  0x4d   :  { %v122_v61 = vadd.s32 536870912, %v121_v60 }
  0x4f   :  { %v123_v62 = vshrl.u32 %v122_v61, 30 }
  0x51   :  { %v124_v63 = vshll.u32 %v123_v62, 30  ;;  %v147_v19 = vsub.s32 4, %v123_v62 }
  0x53   :  { %v125_v0 = vsub.s32 %v121_v60, %v124_v63  ;;  %v148_v22 = vsel %vm63_vm7, %v147_v19, %v123_v62 }
  0x54   :  { %v150_v25 = vsel %vm62_vm8, 0, %v148_v22 }
  0x55   :  { %v127_v1 = vsub.s32 0, %v125_v0  ;;  %v154_v26 = vadd.s32 3, %v150_v25 }
  0x57   :  { %v194_v2 = vmin.u32 %v127_v1, %v125_v0  ;;  %v155_v27 = vand.u32 3, %v154_v26 }
  0x59   :  { %v129_v3 = vclz %v194_v2  ;;  %vm160_vm9 = vcmp.eq.s32.totalorder %v155_v27, 2  ;;  %vm157_vm10 = vcmp.eq.s32.totalorder %v155_v27, 0  ;;  %vm156_vm11 = vcmp.lt.s32.totalorder %v155_v27, 2 }
  0x5b   :  { %v195_v4 = vadd.s32 4294967294, %v129_v3 }
  0x5d   :  { %vm196_vm6 = vcmp.lt.s32.totalorder %v195_v4, 0 }
  0x5e   :  { %v132_v7 = vsel %vm196_vm6, 0, %v195_v4 }
  0x5f   :  { %v133_v8 = vsub.s32 32, %v132_v7  ;;  %v134_v10 = vshll.u32 %v125_v0, %v132_v7  ;;  %v137_v11 = vsub.s32 4294967266, %v132_v7 }
  0x61   :  { %v135_v12 = vshrl.u32 %v117_v5, %v133_v8  ;;  %v138_v13 = vadd.s32 127, %v137_v11 }
  0x63   :  { %v136_v14 = vor.u32 %v135_v12, %v134_v10  ;;  %v139_v15 = vshll.u32 %v138_v13, 23 }
  0x65   :  { %v140_v16 = vor.u32 4788187, %v139_v15  ;;  %v143_v17 = vcvt.s32.f32 %v136_v14 }
  0x67   :  { %v141_v18 = vand.u32 2147483647, %v140_v16 }
  0x69   :  { %v144_v20 = vmul.f32 %v143_v17, %v141_v18 }
  0x6b   :  { %v145_v21 = vxor.u32 2147483648, %v144_v20 }
  0x6d   :  { %v146_v23 = vsel %vm63_vm7, %v145_v21, %v144_v20 }
  0x6e   :  { %v149_v24 = vsel %vm62_vm8, %v344_v6, %v146_v23 }
  0x6f   :  { %211 = vcosq.f32 %v149_v24 }
  0x70   :  { %213 = vsinq.f32 %v149_v24 }
  0x79   :  { %v212_v28 = vpop.eup %211 }
  0x7a   :  { %v214_v29 = vpop.eup %213  ;;  %v161_v30 = vxor.u32 2147483648, %v212_v28 }
  0x7b   :  { %v158_v31 = vxor.u32 2147483648, %v214_v29 }
  0x7c   :  { %v162_v9 = vsel %vm160_vm9, %v161_v30, %v214_v29 }
  0x7d   :  { %v159_v32 = vsel %vm157_vm10, %v212_v28, %v158_v31 }
  0x7e   :  { %v163_v33 = vsel %vm156_vm11, %v159_v32, %v162_v9 }
  0x7f   :  { %v164_v34 = vsel %vm153_vm12, nan, %v163_v33 }
  0x80   :  { %166 = vrot.lane.b32.xlu0 %v164_v34, %s295_s1 }
  0xf2   :  { %v167_v36 = vpop.permute.xlu0 %166 }
  0xf3   :  { %v170_v37 = vsel %vm169_vm13, %v164_v34, %v167_v36 }
  0xf4   :  { %v172_v38 = vadd.f32 %v171_v35, %v170_v37 }
  0xf6   :  { %174 = vst.msk [vmem:[#allocation7] sm:$0xff] %vm173_vm14, %v172_v38 }
  0xf7   :  { %270 = shalt.err (!%p267_p6)
}
  0xf8   :  { %s271_s15 = scalar_lea.hbm %s380_s3, 128 }
  0xf9   :  { %p272_p7 = scmp.ne.s32.totalorder %s380_s3, %s271_s15  ;;  %p275_p8 = scmp.lt.u32.totalorder %s271_s15, %s380_s3 }
  0xfb   :  { %p277_p9 = pnand %p275_p8, %p272_p7 }
  0xfd   :  { %280 = shalt.err (!%p277_p9)
}
  0xfe   :  { %184 = dma.vmem_to_hbm [thread:$0]  %s182_s11, 128, %s380_s3, [#allocation4]  }
  0xff   :  { %285 = dma.done.wait [#allocation4], 128  }
 0x100   :  { %286 = vsyncadd [#allocation4], 4294967168 }
 0x101   :  { %188 = vsyncpa [#allocation3], 1 }
 0x102   :  { %189 = vsyncpa [#allocation6], 1 }
 0x103   :  { %190 = vsyncpa [#allocation4], 1 }

</bundles_post_ra>
